<compile_context>
chip_gen: v7x
topology: tpu7x:2x2x1
jax: 0.10.0
libtpu: 0.0.40
codegen_flags: <defaults>
</compile_context>

<pallas_src>
import functools
import math

import jax
import jax.numpy as jnp
from jax.experimental import pallas as pl
from jax.experimental.pallas import tpu as pltpu


def _round_up(v, m):
    return ((v + m - 1) // m) * m


# ----------------------------- Pallas kernel ------------------------------- #

def _ultra_stable_kernel(x_ref, w_ref, bn_scale_ref, bn_bias_ref, o_ref,
                         *, n, l_valid, lseg, k_size, m):
    """x_ref:        (Cin_pad, Ltot)         channel-major input, one 128-aligned
                                             zero-separated lane segment per batch
       w_ref:        (Cout_tile, K*Cin_pad)  folded conv weight (tap-major)
       bn_scale_ref: (Cout_tile, 1)          folded BatchNorm (eval) scale
       bn_bias_ref:  (Cout_tile, 1)          folded BatchNorm (eval) bias
       o_ref:        (N, Cout_tile, lseg)    output, NCL layout with lane padding
    """
    w_lanes = n * lseg

    # ---- Conv1d (stride=1, 'same', no bias): K lane-shifted taps folded into
    #      a single depth-(K*Cin_pad) MXU matmul (no im2col duplication) ----
    taps = jnp.concatenate(
        [x_ref[:, k:k + w_lanes] for k in range(k_size)], axis=0)        # (K*Cin_pad, N*lseg)
    y = jnp.dot(w_ref[...], taps, preferred_element_type=jnp.float32)    # (Cout_t, N*lseg)

    # ---- validity mask: lanes >= l_valid inside each batch segment are padding ----
    seg_valid = (jax.lax.broadcasted_iota(jnp.int32, (1, lseg), 1)
                 < l_valid).astype(jnp.float32)
    mask = jnp.concatenate([seg_valid] * n, axis=1)                      # (1, N*lseg)

    inv_m = 1.0 / m            # number of valid (batch, length) positions
    inv_m1 = 1.0 / (m - 1)     # torch .std() default: unbiased (Bessel); m == 1 degenerates like torch

    def normalize(v):
        mean = jnp.sum(v * mask, axis=1, keepdims=True) * inv_m
        diff = (v - mean) * mask
        var = jnp.sum(diff * diff, axis=1, keepdims=True) * inv_m1
        # one reciprocal per channel row, then broadcast multiply (no full-width divide);
        # approx=True is an option if ~1e-3 relative error vs. PyTorch is acceptable.
        inv_std = pl.reciprocal(jnp.sqrt(var) + 1e-5, approx=False)
        return jnp.clip((v - mean) * inv_std, -5.0, 5.0)

    y = normalize(y)
    y = y * bn_scale_ref[...] + bn_bias_ref[...]     # BatchNorm1d (eval, running stats)
    y = normalize(y)
    y = y * jax.nn.sigmoid(y)                        # SiLU (EUP transcendental path)
    y = normalize(y)
    # Dropout: identity in eval mode.

    # lane-aligned per-batch stores straight into (N, Cout, lseg) layout
    for b in range(n):                               # static, tiny
        o_ref[b] = y[:, b * lseg:(b + 1) * lseg]


# ------------------------------- wrapper ------------------------------------ #

@jax.jit
def ultra_stable_cnn1layer(x, weight, bn_gamma, bn_beta, bn_rmean, bn_rvar,
                           *, bn_eps=1e-3):
    """x: (N, Cin, L) float32 (PyTorch NCL).  weight: (Cout, Cin, K).
       Returns (N, Cout, L) float32, matching the module's eval-mode forward."""
    n, cin, L = x.shape
    cout, _, k_size = weight.shape
    pad = k_size // 2

    cin_pad = _round_up(cin, 8)                 # sublane-aligned channels
    lseg = _round_up(L + 2 * pad, 128)          # 128-aligned lane segment per batch
    w_lanes = n * lseg                          # conv-output lane width (all batches)
    ltot = w_lanes + 128                        # + tap overhang, stays 128-aligned

    # channel-major input, one zero-separated segment per batch (NO im2col copy)
    xc = jnp.transpose(x.astype(jnp.float32), (1, 0, 2))                    # (Cin, N, L)
    xc = jnp.pad(xc, ((0, cin_pad - cin), (0, 0), (pad, lseg - L - pad)))   # (Cin_pad, N, lseg)
    x_flat = jnp.pad(xc.reshape(cin_pad, w_lanes), ((0, 0), (0, ltot - w_lanes)))
    # (optional on v5e/v6e: cast x_flat / wf to bf16 to halve HBM reads; f32 kept for exactness)

    # conv weight folded to (Cout, K*Cin_pad): w_f[o, k*Cin_pad + c] = weight[o, c, k]
    wf = jnp.transpose(weight.astype(jnp.float32), (0, 2, 1))               # (Cout, K, Cin)
    wf = jnp.pad(wf, ((0, 0), (0, 0), (0, cin_pad - cin))).reshape(cout, k_size * cin_pad)

    # BatchNorm1d (eval) folded affine, shape (Cout, 1)
    inv = bn_gamma / jnp.sqrt(bn_rvar + bn_eps)
    bn_scale = inv.reshape(cout, 1).astype(jnp.float32)
    bn_bias = (bn_beta - bn_rmean * inv).reshape(cout, 1).astype(jnp.float32)

    # grid over output-channel tiles (per-channel stats -> tiles are independent)
    cout_tile = 8 if cout % 8 == 0 else cout
    grid_c = cout // cout_tile

    kernel = functools.partial(_ultra_stable_kernel, n=n, l_valid=L,
                               lseg=lseg, k_size=k_size, m=n * L)

    # advisory cost estimate + explicit VMEM budget (fits v7x's 64 MiB ceiling)
    itemsz = 4
    bytes_accessed = itemsz * (cin_pad * ltot + cout * k_size * cin_pad
                               + 4 * cout + n * cout * lseg)
    flops = 2 * cout * k_size * cin_pad * w_lanes + 40 * cout * w_lanes
    transcendentals = cout * w_lanes + 9 * cout
    vmem_need = itemsz * (cin_pad * ltot
                          + 2 * (cout_tile * k_size * cin_pad + 2 * cout_tile
                                 + n * cout_tile * lseg)
                          + 6 * cout_tile * w_lanes)
    vmem_limit = int(min(max(2 * vmem_need, 4 << 20), 48 << 20))

    out_pad = pl.pallas_call(
        kernel,
        out_shape=jax.ShapeDtypeStruct((n, cout, lseg), jnp.float32),
        grid_spec=pltpu.PrefetchScalarGridSpec(
            num_scalar_prefetch=0,
            grid=(grid_c,),
            in_specs=[
                pl.BlockSpec((cin_pad, ltot), lambda i: (0, 0)),          # x stays resident
                pl.BlockSpec((cout_tile, k_size * cin_pad), lambda i: (i, 0)),
                pl.BlockSpec((cout_tile, 1), lambda i: (i, 0)),
                pl.BlockSpec((cout_tile, 1), lambda i: (i, 0)),
            ],
            out_specs=pl.BlockSpec((n, cout_tile, lseg), lambda i: (0, i, 0)),
        ),
        compiler_params=pltpu.CompilerParams(
            dimension_semantics=("parallel",),        # shard Cout tiles across v7x's 2 TCs
            vmem_limit_bytes=vmem_limit),
        cost_estimate=pl.CostEstimate(flops=int(flops),
                                      transcendentals=int(transcendentals),
                                      bytes_accessed=int(bytes_accessed)),
    )(x_flat, wf, bn_scale, bn_bias)

    # already channel-interleaved NCL; just drop the lane padding (no transpose)
    return out_pad[:, :, :L]


# --------------------------- parameter init --------------------------------- #

def orthogonal_conv_init(key, shape, gain=0.1):
    """nn.init.orthogonal_ on a (Cout, Cin, K) conv weight, then * gain."""
    rows = shape[0]
    cols = math.prod(shape[1:])
    big, small = max(rows, cols), min(rows, cols)
    a = jax.random.normal(key, (big, small), dtype=jnp.float32)
    q, r = jnp.linalg.qr(a)
    q = q * jnp.sign(jnp.diag(r))[None, :]
    w = q if rows >= cols else q.T          # orthonormal rows/cols
    return (gain * w).reshape(shape).astype(jnp.float32)


# --------------------------------- main -------------------------------------- #

if __name__ == "__main__":
    N, Cin, L = 2, 4, 16
    Cout, K = 8, 5

    key = jax.random.PRNGKey(0)
    kx, kw = jax.random.split(key)

    x = jax.random.normal(kx, (N, Cin, L), dtype=jnp.float32)
    conv_weight = orthogonal_conv_init(kw, (Cout, Cin, K), gain=0.1)

    # BatchNorm1d(out_channels, eps=1e-3) freshly-initialized parameters/buffers
    bn_gamma = jnp.ones((Cout,), jnp.float32)
    bn_beta = jnp.zeros((Cout,), jnp.float32)
    bn_rmean = jnp.zeros((Cout,), jnp.float32)
    bn_rvar = jnp.ones((Cout,), jnp.float32)

    out = ultra_stable_cnn1layer(x, conv_weight, bn_gamma, bn_beta,
                                 bn_rmean, bn_rvar, bn_eps=1e-3)
    jax.block_until_ready(out)
    assert out.shape == (N, Cout, L)
    assert bool(jnp.all(jnp.isfinite(out)))
    print("KERNEL_OK")
</pallas_src>

<mosaic_0001>
module attributes {stable_mosaic.version = 11 : i64} {
  func.func @_ultra_stable_kernel(%arg0: i32, %arg1: memref<8x384xf32, #tpu.memory_space<vmem>>, %arg2: memref<8x40xf32, #tpu.memory_space<vmem>>, %arg3: memref<8x1xf32, #tpu.memory_space<vmem>>, %arg4: memref<8x1xf32, #tpu.memory_space<vmem>>, %arg5: memref<2x8x128xf32, #tpu.memory_space<vmem>>) attributes {dimension_semantics = [#tpu.dimension_semantics<parallel>], iteration_bounds = array<i64: 1>, scalar_prefetch = 0 : i64, scratch_operands = 0 : i64, tpu.core_type = #tpu.core_type<tc>, window_params = [{pipeline_mode = #tpu.pipeline_mode<synchronous>, transform_indices = @transform_0, window_bounds = array<i64: 8, 384>}, {transform_indices = @transform_1, window_bounds = array<i64: 8, 40>}, {transform_indices = @transform_2, window_bounds = array<i64: 8, 1>}, {transform_indices = @transform_3, window_bounds = array<i64: 8, 1>}, {transform_indices = @transform_4, window_bounds = array<i64: 2, 8, 128>}]} {
    %c0 = arith.constant 0 : index
    %c0_0 = arith.constant 0 : index
    %0 = vector.load %arg1[%c0, %c0_0] : memref<8x384xf32, #tpu.memory_space<vmem>>, vector<8x256xf32>
    %c0_1 = arith.constant 0 : index
    %c1 = arith.constant 1 : index
    %1 = vector.load %arg1[%c0_1, %c1] : memref<8x384xf32, #tpu.memory_space<vmem>>, vector<8x256xf32>
    %c0_2 = arith.constant 0 : index
    %c2 = arith.constant 2 : index
    %2 = vector.load %arg1[%c0_2, %c2] : memref<8x384xf32, #tpu.memory_space<vmem>>, vector<8x256xf32>
    %c0_3 = arith.constant 0 : index
    %c3 = arith.constant 3 : index
    %3 = vector.load %arg1[%c0_3, %c3] : memref<8x384xf32, #tpu.memory_space<vmem>>, vector<8x256xf32>
    %c0_4 = arith.constant 0 : index
    %c4 = arith.constant 4 : index
    %4 = vector.load %arg1[%c0_4, %c4] : memref<8x384xf32, #tpu.memory_space<vmem>>, vector<8x256xf32>
    %5 = tpu.concatenate %0, %1, %2, %3, %4 in 0 : vector<8x256xf32>, vector<8x256xf32>, vector<8x256xf32>, vector<8x256xf32>, vector<8x256xf32> -> vector<40x256xf32>
    %c0_5 = arith.constant 0 : index
    %c0_6 = arith.constant 0 : index
    %6 = vector.load %arg2[%c0_5, %c0_6] : memref<8x40xf32, #tpu.memory_space<vmem>>, vector<8x40xf32>
    %cst = arith.constant dense<0.000000e+00> : vector<8x256xf32>
    %7 = tpu.matmul %6, %5, %cst {dimension_numbers = #tpu.dot_dimension_numbers<[1], [0], [0], [1], [0, 0, 1, 1], [], []>} : vector<8x40xf32>, vector<40x256xf32>, vector<8x256xf32> -> vector<8x256xf32>
    %8 = tpu.iota {dimensions = array<i32: 1>} : vector<1x128xi32>
    %c16_i32 = arith.constant 16 : i32
    %9 = vector.broadcast %c16_i32 : i32 to vector<1x128xi32>
    %10 = arith.cmpi slt, %8, %9 : vector<1x128xi32>
    %11 = arith.extui %10 : vector<1x128xi1> to vector<1x128xi32>
    %12 = arith.sitofp %11 : vector<1x128xi32> to vector<1x128xf32>
    %13 = tpu.concatenate %12, %12 in 1 : vector<1x128xf32>, vector<1x128xf32> -> vector<1x256xf32>
    %14 = vector.broadcast %13 : vector<1x256xf32> to vector<8x256xf32>
    %15 = arith.mulf %7, %14 : vector<8x256xf32>
    %cst_7 = arith.constant dense<0.000000e+00> : vector<8xf32>
    %16 = vector.multi_reduction <add>, %15, %cst_7 [1] : vector<8x256xf32> to vector<8xf32>
    %17 = vector.shape_cast %16 : vector<8xf32> to vector<8x1xf32>
    %cst_8 = arith.constant 3.125000e-02 : f32
    %18 = vector.broadcast %cst_8 : f32 to vector<8x1xf32>
    %19 = arith.mulf %17, %18 : vector<8x1xf32>
    %20 = vector.broadcast %19 : vector<8x1xf32> to vector<8x256xf32>
    %21 = arith.subf %7, %20 : vector<8x256xf32>
    %22 = vector.broadcast %13 : vector<1x256xf32> to vector<8x256xf32>
    %23 = arith.mulf %21, %22 : vector<8x256xf32>
    %24 = arith.mulf %23, %23 : vector<8x256xf32>
    %cst_9 = arith.constant dense<0.000000e+00> : vector<8xf32>
    %25 = vector.multi_reduction <add>, %24, %cst_9 [1] : vector<8x256xf32> to vector<8xf32>
    %26 = vector.shape_cast %25 : vector<8xf32> to vector<8x1xf32>
    %cst_10 = arith.constant 0.0322580636 : f32
    %27 = vector.broadcast %cst_10 : f32 to vector<8x1xf32>
    %28 = arith.mulf %26, %27 : vector<8x1xf32>
    %29 = math.sqrt %28 : vector<8x1xf32>
    %cst_11 = arith.constant 9.99999974E-6 : f32
    %30 = vector.broadcast %cst_11 : f32 to vector<8x1xf32>
    %31 = arith.addf %29, %30 : vector<8x1xf32>
    %32 = tpu.reciprocal %31 : vector<8x1xf32> -> vector<8x1xf32>
    %33 = vector.broadcast %19 : vector<8x1xf32> to vector<8x256xf32>
    %34 = arith.subf %7, %33 : vector<8x256xf32>
    %35 = vector.broadcast %32 : vector<8x1xf32> to vector<8x256xf32>
    %36 = arith.mulf %34, %35 : vector<8x256xf32>
    %cst_12 = arith.constant -5.000000e+00 : f32
    %cst_13 = arith.constant 5.000000e+00 : f32
    %37 = vector.broadcast %cst_12 : f32 to vector<8x256xf32>
    %38 = arith.maximumf %37, %36 : vector<8x256xf32>
    %39 = vector.broadcast %cst_13 : f32 to vector<8x256xf32>
    %40 = arith.minimumf %39, %38 : vector<8x256xf32>
    %c0_14 = arith.constant 0 : index
    %c0_15 = arith.constant 0 : index
    %41 = vector.load %arg3[%c0_14, %c0_15] : memref<8x1xf32, #tpu.memory_space<vmem>>, vector<8x1xf32>
    %42 = vector.broadcast %41 : vector<8x1xf32> to vector<8x256xf32>
    %43 = arith.mulf %40, %42 : vector<8x256xf32>
    %c0_16 = arith.constant 0 : index
    %c0_17 = arith.constant 0 : index
    %44 = vector.load %arg4[%c0_16, %c0_17] : memref<8x1xf32, #tpu.memory_space<vmem>>, vector<8x1xf32>
    %45 = vector.broadcast %44 : vector<8x1xf32> to vector<8x256xf32>
    %46 = arith.addf %43, %45 : vector<8x256xf32>
    %47 = vector.broadcast %13 : vector<1x256xf32> to vector<8x256xf32>
    %48 = arith.mulf %46, %47 : vector<8x256xf32>
    %cst_18 = arith.constant dense<0.000000e+00> : vector<8xf32>
    %49 = vector.multi_reduction <add>, %48, %cst_18 [1] : vector<8x256xf32> to vector<8xf32>
    %50 = vector.shape_cast %49 : vector<8xf32> to vector<8x1xf32>
    %cst_19 = arith.constant 3.125000e-02 : f32
    %51 = vector.broadcast %cst_19 : f32 to vector<8x1xf32>
    %52 = arith.mulf %50, %51 : vector<8x1xf32>
    %53 = vector.broadcast %52 : vector<8x1xf32> to vector<8x256xf32>
    %54 = arith.subf %46, %53 : vector<8x256xf32>
    %55 = vector.broadcast %13 : vector<1x256xf32> to vector<8x256xf32>
    %56 = arith.mulf %54, %55 : vector<8x256xf32>
    %57 = arith.mulf %56, %56 : vector<8x256xf32>
    %cst_20 = arith.constant dense<0.000000e+00> : vector<8xf32>
    %58 = vector.multi_reduction <add>, %57, %cst_20 [1] : vector<8x256xf32> to vector<8xf32>
    %59 = vector.shape_cast %58 : vector<8xf32> to vector<8x1xf32>
    %cst_21 = arith.constant 0.0322580636 : f32
    %60 = vector.broadcast %cst_21 : f32 to vector<8x1xf32>
    %61 = arith.mulf %59, %60 : vector<8x1xf32>
    %62 = math.sqrt %61 : vector<8x1xf32>
    %cst_22 = arith.constant 9.99999974E-6 : f32
    %63 = vector.broadcast %cst_22 : f32 to vector<8x1xf32>
    %64 = arith.addf %62, %63 : vector<8x1xf32>
    %65 = tpu.reciprocal %64 : vector<8x1xf32> -> vector<8x1xf32>
    %66 = vector.broadcast %52 : vector<8x1xf32> to vector<8x256xf32>
    %67 = arith.subf %46, %66 : vector<8x256xf32>
    %68 = vector.broadcast %65 : vector<8x1xf32> to vector<8x256xf32>
    %69 = arith.mulf %67, %68 : vector<8x256xf32>
    %cst_23 = arith.constant -5.000000e+00 : f32
    %cst_24 = arith.constant 5.000000e+00 : f32
    %70 = vector.broadcast %cst_23 : f32 to vector<8x256xf32>
    %71 = arith.maximumf %70, %69 : vector<8x256xf32>
    %72 = vector.broadcast %cst_24 : f32 to vector<8x256xf32>
    %73 = arith.minimumf %72, %71 : vector<8x256xf32>
    %74 = arith.negf %73 : vector<8x256xf32>
    %75 = math.exp %74 : vector<8x256xf32>
    %cst_25 = arith.constant 1.000000e+00 : f32
    %76 = vector.broadcast %cst_25 : f32 to vector<8x256xf32>
    %77 = arith.addf %76, %75 : vector<8x256xf32>
    %78 = arith.divf %76, %77 : vector<8x256xf32>
    %79 = arith.mulf %73, %78 : vector<8x256xf32>
    %80 = vector.broadcast %13 : vector<1x256xf32> to vector<8x256xf32>
    %81 = arith.mulf %79, %80 : vector<8x256xf32>
    %cst_26 = arith.constant dense<0.000000e+00> : vector<8xf32>
    %82 = vector.multi_reduction <add>, %81, %cst_26 [1] : vector<8x256xf32> to vector<8xf32>
    %83 = vector.shape_cast %82 : vector<8xf32> to vector<8x1xf32>
    %cst_27 = arith.constant 3.125000e-02 : f32
    %84 = vector.broadcast %cst_27 : f32 to vector<8x1xf32>
    %85 = arith.mulf %83, %84 : vector<8x1xf32>
    %86 = vector.broadcast %85 : vector<8x1xf32> to vector<8x256xf32>
    %87 = arith.subf %79, %86 : vector<8x256xf32>
    %88 = vector.broadcast %13 : vector<1x256xf32> to vector<8x256xf32>
    %89 = arith.mulf %87, %88 : vector<8x256xf32>
    %90 = arith.mulf %89, %89 : vector<8x256xf32>
    %cst_28 = arith.constant dense<0.000000e+00> : vector<8xf32>
    %91 = vector.multi_reduction <add>, %90, %cst_28 [1] : vector<8x256xf32> to vector<8xf32>
    %92 = vector.shape_cast %91 : vector<8xf32> to vector<8x1xf32>
    %cst_29 = arith.constant 0.0322580636 : f32
    %93 = vector.broadcast %cst_29 : f32 to vector<8x1xf32>
    %94 = arith.mulf %92, %93 : vector<8x1xf32>
    %95 = math.sqrt %94 : vector<8x1xf32>
    %cst_30 = arith.constant 9.99999974E-6 : f32
    %96 = vector.broadcast %cst_30 : f32 to vector<8x1xf32>
    %97 = arith.addf %95, %96 : vector<8x1xf32>
    %98 = tpu.reciprocal %97 : vector<8x1xf32> -> vector<8x1xf32>
    %99 = vector.broadcast %85 : vector<8x1xf32> to vector<8x256xf32>
    %100 = arith.subf %79, %99 : vector<8x256xf32>
    %101 = vector.broadcast %98 : vector<8x1xf32> to vector<8x256xf32>
    %102 = arith.mulf %100, %101 : vector<8x256xf32>
    %cst_31 = arith.constant -5.000000e+00 : f32
    %cst_32 = arith.constant 5.000000e+00 : f32
    %103 = vector.broadcast %cst_31 : f32 to vector<8x256xf32>
    %104 = arith.maximumf %103, %102 : vector<8x256xf32>
    %105 = vector.broadcast %cst_32 : f32 to vector<8x256xf32>
    %106 = arith.minimumf %105, %104 : vector<8x256xf32>
    %107 = vector.extract_strided_slice %106 {offsets = [0, 0], sizes = [8, 128], strides = [1, 1]} : vector<8x256xf32> to vector<8x128xf32>
    %c0_33 = arith.constant 0 : index
    %c0_34 = arith.constant 0 : index
    %c0_35 = arith.constant 0 : index
    %108 = vector.load %arg5[%c0_33, %c0_34, %c0_35] : memref<2x8x128xf32, #tpu.memory_space<vmem>>, vector<1x8x128xf32>
    %109 = vector.shape_cast %108 : vector<1x8x128xf32> to vector<8x128xf32>
    %110 = vector.shape_cast %107 : vector<8x128xf32> to vector<1x8x128xf32>
    tpu.vector_store %arg5[%c0_33, %c0_34, %c0_35], %110 {strides = array<i32>} : memref<2x8x128xf32, #tpu.memory_space<vmem>>, vector<1x8x128xf32>,
    %111 = vector.extract_strided_slice %106 {offsets = [0, 128], sizes = [8, 128], strides = [1, 1]} : vector<8x256xf32> to vector<8x128xf32>
    %c1_36 = arith.constant 1 : index
    %c0_37 = arith.constant 0 : index
    %c0_38 = arith.constant 0 : index
    %112 = vector.load %arg5[%c1_36, %c0_37, %c0_38] : memref<2x8x128xf32, #tpu.memory_space<vmem>>, vector<1x8x128xf32>
    %113 = vector.shape_cast %112 : vector<1x8x128xf32> to vector<8x128xf32>
    %114 = vector.shape_cast %111 : vector<8x128xf32> to vector<1x8x128xf32>
    tpu.vector_store %arg5[%c1_36, %c0_37, %c0_38], %114 {strides = array<i32>} : memref<2x8x128xf32, #tpu.memory_space<vmem>>, vector<1x8x128xf32>,
    return
  }
  func.func @transform_0(%arg0: i32) -> (i32, i32) {
    %c0_i32 = arith.constant 0 : i32
    %c0_i32_0 = arith.constant 0 : i32
    %c0_i32_1 = arith.constant 0 : i32
    return %c0_i32, %c0_i32_0 : i32, i32
  }
  func.func @transform_1(%arg0: i32) -> (i32, i32) {
    %c0_i32 = arith.constant 0 : i32
    %c0_i32_0 = arith.constant 0 : i32
    return %arg0, %c0_i32 : i32, i32
  }
  func.func @transform_2(%arg0: i32) -> (i32, i32) {
    %c0_i32 = arith.constant 0 : i32
    %c0_i32_0 = arith.constant 0 : i32
    return %arg0, %c0_i32 : i32, i32
  }
  func.func @transform_3(%arg0: i32) -> (i32, i32) {
    %c0_i32 = arith.constant 0 : i32
    %c0_i32_0 = arith.constant 0 : i32
    return %arg0, %c0_i32 : i32, i32
  }
  func.func @transform_4(%arg0: i32) -> (i32, i32, i32) {
    %c0_i32 = arith.constant 0 : i32
    %c0_i32_0 = arith.constant 0 : i32
    %c0_i32_1 = arith.constant 0 : i32
    return %c0_i32, %arg0, %c0_i32_0 : i32, i32, i32
  }
}

</mosaic_0001>

<bundles_post_ra>
// kernel: ultra_stable_cnn1layer.1
= control target key start
LH: loop header
LB: loop body
LE: loop exit
PB: predicated region body
PF: predicated region fallthrough
CT: control target
= control target key end

     0   :  { %s463_s0 = inlined_call_operand.vmem [shape: f32[8,384], index: 0, kind: input, shape index: {}]   ;;  %s464_s1 = inlined_call_operand.vmem [shape: f32[8,40], index: 1, kind: input, shape index: {}]   ;;  %s465_s2 = inlined_call_operand.vmem [shape: f32[8,1], index: 2, kind: input, shape index: {}]   ;;  %s466_s3 = inlined_call_operand.vmem [shape: f32[8,1], index: 3, kind: input, shape index: {}]   ;;  %s467_s4 = inlined_call_operand.hbm [shape: f32[2,8,128], index: 4, kind: output, shape index: {}]  }
   0x1   :  { %v21_v0 = vld [vmem:[%s463_s0 + $0x8] sm:$0xff]  ;;  %v22_v1 = vld [vmem:[%s463_s0 + $0x10] sm:$0xff] }
   0x2   :  { %v329_v2 = vpack.i.bf16 %v22_v1, %v21_v0 }
   0x3   :  { %9 = vsyncpa [#allocation3], 0  ;;  %s385_s19 = smov 126   ;;  %s386_s20 = smov 127   ;;  %v20_v3 = vld [vmem:[%s463_s0] sm:$0xff]  ;;  %v388_v4 = vmov 0.0   ;;  %v146_v33 = vlaneseq }
   0x4   :  { %330 = vrot.lane.b32.xlu1 %v329_v2, %s385_s19  ;;  %325 = vrot.lane.b32.xlu0 %v329_v2, %s386_s20  ;;  %s387_s23 = smov 125   ;;  %s389_s24 = smov 124   ;;  %vm32_vm0 = vcmask 1039360   ;;  %vm54_vm1 = vcmask 1022976   ;;  %vm43_vm2 = vcmask 1031168   ;;  %vm65_vm3 = vcmask 1014784  }
   0x5   :  { %139 = vmatprep.mubr.f32.mxu0 %v388_v4  ;;  %v70_v31 = vld [vmem:[%s464_s1] sm:$0xff]  ;;  %vm71_vm4 = vcmask 326656   ;;  %v147_v34 = vand.u32 127, %v146_v33  ;;  %v152_v35 = vshrl.u32 %v146_v33, 7  ;;  %v390_v44 = vmov 0  }
   0x6   :  { %339 = vset.pattern.permute.xlu0 %v390_v44  ;;  %340 = vset.pattern.permute.xlu1 %v390_v44  ;;  %v194_v45 = vld [vmem:[%s466_s3] sm:$0xff] }
   0x7   :  { %vm148_vm5 = vcmp.lt.s32.totalorder %v147_v34, 16  ;;  %v153_v36 = vsub.s32 0, %v152_v35  ;;  %v186_v55 = vld [vmem:[%s465_s2] sm:$0xff]  ;;  %s391_s2 = smov [#allocation2]  }
   0x8   :  { %335 = vrot.lane.b32.xlu1 %v329_v2, %s387_s23  ;;  %26 = vrot.lane.b32.xlu0 %v20_v3, %s386_s20  ;;  %v298_v37 = vsel %vm148_vm5, 1.0, %v388_v4  ;;  %s286_s3 = sshll.u32 %s391_s2, 4  ;;  %s287_s3 = int_to_ptr.vmem [resolvable:$true] %s286_s3 }
   0x9   :  { %v431_v38 = vrot.slane %v298_v37, %v153_v36  ;;  %s361_s29 = scalar_lea.vmem %s287_s3, 256  ;;  %p366_p1 = scmp.lt.s32.totalorder %s287_s3, %s287_s3 }
   0xa   :  { %p362_p0 = scmp.ne.s32.totalorder %s287_s3, %s361_s29  ;;  %p367_p2 = scmp.lt.s32.totalorder %s361_s29, %s361_s29 }
   0xc   :  { %48 = vrot.lane.b32.xlu1 %v20_v3, %s387_s23  ;;  %37 = vrot.lane.b32.xlu0 %v20_v3, %s385_s19  ;;  %p368_p3 = por %p367_p2, %p366_p1 }
   0xe   :  { %p369_p4 = pnand %p368_p3, %p362_p0 }
  0x10   :  { %63 = vrot.lane.b32.xlu1 %v22_v1, %s389_s24  ;;  %61 = vrot.lane.b32.xlu0 %v21_v0, %s389_s24 }
  0x14   :  { %59 = vrot.lane.b32.xlu0 %v20_v3, %s389_s24 }
  0x76   :  { %v331_v5 = vpop.permute.xlu1 %330  ;;  %v326_v6 = vpop.permute.xlu0 %325 }
  0x77   :  { %v328_v7 = vunpack.i.h.bf16 %v326_v6  ;;  %v327_v8 = vunpack.i.l.bf16 %v326_v6  ;;  %v333_v9 = vunpack.i.h.bf16 %v331_v5  ;;  %v332_v10 = vunpack.i.l.bf16 %v331_v5 }
  0x79   :  { %v34_v11 = vsel %vm32_vm0, %v327_v8, %v328_v7  ;;  %v45_v19 = vsel %vm43_vm2, %v332_v10, %v333_v9 }
  0x7a   :  { %v336_v12 = vpop.permute.xlu1 %335  ;;  %v27_v13 = vpop.permute.xlu0 %26  ;;  %v307_v14 = vpack.c.bf16 %v34_v11, %v21_v0 }
  0x7b   :  { %v338_v15 = vunpack.i.h.bf16 %v336_v12  ;;  %v337_v16 = vunpack.i.l.bf16 %v336_v12  ;;  %v33_v17 = vsel %vm32_vm0, %v27_v13, %v327_v8 }
  0x7c   :  { %308 = vmatprep.subr.bf16.mxu0 %v307_v14  ;;  %v309_v18 = vpack.c.bf16 %v33_v17, %v20_v3 }
  0x7d   :  { %v56_v20 = vsel %vm54_vm1, %v337_v16, %v338_v15 }
  0x7e   :  { %v49_v21 = vpop.permute.xlu1 %48  ;;  %v38_v22 = vpop.permute.xlu0 %37  ;;  %310 = vmatpush1.bf16.msra.mxu0 %v309_v18  ;;  %v311_v23 = vpack.c.bf16 %v56_v20, %v45_v19 }
  0x7f   :  { %v55_v24 = vsel %vm54_vm1, %v49_v21, %v337_v16  ;;  %v44_v25 = vsel %vm43_vm2, %v38_v22, %v332_v10 }
  0x80   :  { %v313_v26 = vpack.c.bf16 %v55_v24, %v44_v25  ;;  %312 = vmatprep.subr.bf16.mxu0 %v311_v23 }
  0x82   :  { %v64_v27 = vpop.permute.xlu1 %63  ;;  %v62_v28 = vpop.permute.xlu0 %61  ;;  %314 = vmatpush1.bf16.msra.mxu0 %v313_v26 }
  0x83   :  { %v67_v29 = vsel %vm65_vm3, %v62_v28, %v64_v27 }
  0x84   :  { %83 = vmatprep.subr.mxu0 %v67_v29 }
  0x86   :  { %v60_v30 = vpop.permute.xlu0 %59 }
  0x87   :  { %v66_v32 = vsel %vm65_vm3, %v60_v30, %v62_v28 }
  0x88   :  { %84 = vmatpush1.msra.mxu0 %v66_v32 }
  0x89   :  { %297 = vmatmul.mubr.msk.f32.vlgmr.msra.gmra.mrb[0].mxu0 %vm71_vm4, %v70_v31 }
 0x15c   :  { %v141_v39 = vpop.f32.mrb[0].mxu0 }
 0x15d   :  { %v155_v40 = vmul.f32 %v431_v38, %v141_v39  ;;  %v143_v41 = vpop.f32.mrb[1].mxu0 }
 0x15e   :  { %v156_v42 = vmul.f32 %v431_v38, %v143_v41 }
 0x160   :  { %v157_v43 = vadd.f32 %v156_v42, %v155_v40 }
 0x162   :  { %158 = vadd.xlane.f32.xlu1 %v157_v43 }
 0x173   :  { %197 = vperm.xlu1 %340, %v194_v45  }
 0x1ef   :  { %v159_v46 = vpop.xlane.xlu1 %158 }
 0x1f0   :  { %v160_v47 = vmul.f32 0.03125, %v159_v46 }
 0x1f2   :  { %v161_v48 = vsub.f32 %v141_v39, %v160_v47  ;;  %v162_v49 = vsub.f32 %v143_v41, %v160_v47 }
 0x1f3   :  { %v198_v6 = vpop.permute.xlu1 %197 }
 0x1f4   :  { %v163_v50 = vmul.f32 %v161_v48, %v431_v38  ;;  %v164_v51 = vmul.f32 %v162_v49, %v431_v38 }
 0x1f6   :  { %v165_v52 = vmul.f32 %v163_v50, %v163_v50  ;;  %v166_v53 = vmul.f32 %v164_v51, %v164_v51 }
 0x1f8   :  { %v167_v54 = vadd.f32 %v166_v53, %v165_v52 }
 0x1fa   :  { %168 = vadd.xlane.f32.xlu0 %v167_v54 }
 0x210   :  { %189 = vperm.xlu0 %339, %v186_v55  }
 0x287   :  { %v169_v56 = vpop.xlane.xlu0 %168 }
 0x288   :  { %v170_v57 = vmul.f32 0.032258064, %v169_v56 }
 0x28a   :  { %341 = vrsqrt.f32 %v170_v57  ;;  %vm173_vm6 = vcmp.eq.f32.partialorder %v170_v57, inf  ;;  %v176_v60 = vand.u32 2147483648, %v170_v57  ;;  %vm175_vm7 = vcmp.eq.f32.partialorder %v170_v57, 0.0 }
 0x28f   :  { %v190_v3 = vpop.permute.xlu0 %189 }
 0x294   :  { %v342_v58 = vpop.eup %341 }
 0x295   :  { %v172_v59 = vmul.f32 %v342_v58, %v170_v57 }
 0x297   :  { %v174_v61 = vsel %vm173_vm6, %v170_v57, %v172_v59 }
 0x298   :  { %v177_v62 = vsel %vm175_vm7, %v176_v60, %v174_v61 }
 0x299   :  { %v178_v63 = vadd.f32 1e-05, %v177_v62 }
 0x29b   :  { %343 = vrcp.f32 %v178_v63 }
 0x2a5   :  { %v344_v0 = vpop.eup %343 }
 0x2a6   :  { %v180_v1 = vmul.f32 %v344_v0, %v161_v48  ;;  %v181_v2 = vmul.f32 %v344_v0, %v162_v49 }
 0x2a8   :  { %v299_v4 = vclamps-f32 %v180_v1, 5.0  ;;  %v300_v5 = vclamps-f32 %v181_v2, 5.0 }
 0x2aa   :  { %v192_v7 = vmul.f32 %v299_v4, %v190_v3  ;;  %v193_v8 = vmul.f32 %v300_v5, %v190_v3 }
 0x2ac   :  { %v200_v9 = vadd.f32 %v198_v6, %v192_v7  ;;  %v201_v10 = vadd.f32 %v198_v6, %v193_v8 }
 0x2ae   :  { %v202_v11 = vmul.f32 %v200_v9, %v431_v38  ;;  %v203_v12 = vmul.f32 %v201_v10, %v431_v38 }
 0x2b0   :  { %v204_v13 = vadd.f32 %v203_v12, %v202_v11 }
 0x2b2   :  { %205 = vadd.xlane.f32.xlu1 %v204_v13 }
 0x33f   :  { %v206_v14 = vpop.xlane.xlu1 %205 }
 0x340   :  { %v207_v15 = vmul.f32 0.03125, %v206_v14 }
 0x342   :  { %v208_v16 = vsub.f32 %v200_v9, %v207_v15  ;;  %v209_v17 = vsub.f32 %v201_v10, %v207_v15 }
 0x344   :  { %v210_v18 = vmul.f32 %v208_v16, %v431_v38  ;;  %v211_v19 = vmul.f32 %v209_v17, %v431_v38 }
 0x346   :  { %v212_v20 = vmul.f32 %v210_v18, %v210_v18  ;;  %v213_v21 = vmul.f32 %v211_v19, %v211_v19 }
 0x348   :  { %v214_v22 = vadd.f32 %v213_v21, %v212_v20 }
 0x34a   :  { %215 = vadd.xlane.f32.xlu0 %v214_v22 }
 0x3d7   :  { %v216_v23 = vpop.xlane.xlu0 %215 }
 0x3d8   :  { %v217_v24 = vmul.f32 0.032258064, %v216_v23 }
 0x3da   :  { %345 = vrsqrt.f32 %v217_v24  ;;  %vm220_vm8 = vcmp.eq.f32.partialorder %v217_v24, inf  ;;  %v223_v27 = vand.u32 2147483648, %v217_v24  ;;  %vm222_vm9 = vcmp.eq.f32.partialorder %v217_v24, 0.0 }
 0x3e4   :  { %v346_v25 = vpop.eup %345 }
 0x3e5   :  { %v219_v26 = vmul.f32 %v346_v25, %v217_v24 }
 0x3e7   :  { %v221_v28 = vsel %vm220_vm8, %v217_v24, %v219_v26 }
 0x3e8   :  { %v224_v29 = vsel %vm222_vm9, %v223_v27, %v221_v28 }
 0x3e9   :  { %v225_v30 = vadd.f32 1e-05, %v224_v29 }
 0x3eb   :  { %347 = vrcp.f32 %v225_v30 }
 0x3f5   :  { %v348_v31 = vpop.eup %347 }
 0x3f6   :  { %v227_v32 = vmul.f32 %v348_v31, %v208_v16  ;;  %v228_v33 = vmul.f32 %v348_v31, %v209_v17 }
 0x3f8   :  { %v301_v34 = vclamps-f32 %v227_v32, 5.0  ;;  %v302_v35 = vclamps-f32 %v228_v33, 5.0 }
 0x3fa   :  { %v303_v36 = vmul.f32 -1.442695, %v301_v34  ;;  %v304_v37 = vmul.f32 -1.442695, %v302_v35 }
 0x3fc   :  { %349 = vpow2.f32 %v303_v36 }
 0x3fd   :  { %351 = vpow2.f32 %v304_v37 }
 0x406   :  { %v350_v39 = vpop.eup %349 }
 0x407   :  { %v352_v40 = vpop.eup %351  ;;  %v239_v41 = vadd.f32 1.0, %v350_v39 }
 0x408   :  { %v240_v42 = vadd.f32 1.0, %v352_v40 }
 0x409   :  { %353 = vrcp.f32 %v239_v41 }
 0x40a   :  { %355 = vrcp.f32 %v240_v42 }
 0x413   :  { %v354_v43 = vpop.eup %353 }
 0x414   :  { %v356_v44 = vpop.eup %355  ;;  %v245_v45 = vmul.f32 %v354_v43, %v301_v34 }
 0x415   :  { %v246_v46 = vmul.f32 %v356_v44, %v302_v35 }
 0x416   :  { %v247_v47 = vmul.f32 %v245_v45, %v431_v38 }
 0x417   :  { %v248_v48 = vmul.f32 %v246_v46, %v431_v38 }
 0x419   :  { %v249_v49 = vadd.f32 %v248_v48, %v247_v47 }
 0x41b   :  { %250 = vadd.xlane.f32.xlu1 %v249_v49 }
 0x4a8   :  { %v251_v50 = vpop.xlane.xlu1 %250 }
 0x4a9   :  { %v252_v51 = vmul.f32 0.03125, %v251_v50 }
 0x4ab   :  { %v253_v52 = vsub.f32 %v245_v45, %v252_v51  ;;  %v254_v53 = vsub.f32 %v246_v46, %v252_v51 }
 0x4ad   :  { %v255_v54 = vmul.f32 %v253_v52, %v431_v38  ;;  %v256_v55 = vmul.f32 %v254_v53, %v431_v38 }
 0x4af   :  { %v257_v56 = vmul.f32 %v255_v54, %v255_v54  ;;  %v258_v57 = vmul.f32 %v256_v55, %v256_v55 }
 0x4b1   :  { %v259_v58 = vadd.f32 %v258_v57, %v257_v56 }
 0x4b3   :  { %260 = vadd.xlane.f32.xlu1 %v259_v58 }
 0x540   :  { %v261_v59 = vpop.xlane.xlu1 %260 }
 0x541   :  { %v262_v60 = vmul.f32 0.032258064, %v261_v59 }
 0x543   :  { %357 = vrsqrt.f32 %v262_v60  ;;  %vm265_vm10 = vcmp.eq.f32.partialorder %v262_v60, inf  ;;  %v268_v63 = vand.u32 2147483648, %v262_v60  ;;  %vm267_vm11 = vcmp.eq.f32.partialorder %v262_v60, 0.0 }
 0x54d   :  { %v358_v61 = vpop.eup %357 }
 0x54e   :  { %v264_v62 = vmul.f32 %v358_v61, %v262_v60 }
 0x550   :  { %v266_v0 = vsel %vm265_vm10, %v262_v60, %v264_v62 }
 0x551   :  { %v269_v1 = vsel %vm267_vm11, %v268_v63, %v266_v0 }
 0x552   :  { %v270_v2 = vadd.f32 1e-05, %v269_v1 }
 0x554   :  { %359 = vrcp.f32 %v270_v2 }
 0x55e   :  { %v360_v3 = vpop.eup %359 }
 0x55f   :  { %v272_v38 = vmul.f32 %v360_v3, %v253_v52  ;;  %v273_v4 = vmul.f32 %v360_v3, %v254_v53 }
 0x561   :  { %v305_v5 = vclamps-f32 %v272_v38, 5.0  ;;  %v306_v6 = vclamps-f32 %v273_v4, 5.0 }
 0x563   :  { %278 = vst [vmem:[#allocation2] sm:$0xff] %v305_v5  ;;  %280 = vst [vmem:[#allocation2 + $0x8] sm:$0xff] %v306_v6 }
 0x564   :  { %372 = shalt.err (!%p369_p4)
}
 0x565   :  { %s373_s6 = scalar_lea.hbm %s467_s4, 256 }
 0x566   :  { %p374_p5 = scmp.ne.s32.totalorder %s467_s4, %s373_s6  ;;  %p377_p6 = scmp.lt.u32.totalorder %s373_s6, %s467_s4 }
 0x568   :  { %p379_p7 = pnand %p377_p6, %p374_p5 }
 0x56a   :  { %382 = shalt.err (!%p379_p7)
}
 0x56b   :  { %s392_s11 = smov 128   ;;  %s393_s12 = smov 8  }
 0x56c   :  { %292 = dma.vmem_to_hbm [thread:$0]  %s287_s3, 256, %s467_s4, [#allocation3], %s392_s11, %s392_s11, %s393_s12  }
 0x56d   :  { %383 = dma.done.wait [#allocation3], 256  }
 0x56e   :  { %384 = vsyncadd [#allocation3], 4294967040 }
 0x56f   :  { %296 = vsyncpa [#allocation3], 1 }

</bundles_post_ra>
